<compile_context>
chip_gen: v7x
topology: tpu7x:2x2x1
jax: 0.10.0
libtpu: 0.0.40
codegen_flags: <defaults>
</compile_context>

<pallas_src>
import functools
import math

import jax
import jax.numpy as jnp
from jax.experimental import pallas as pl
from jax.experimental.pallas import tpu as pltpu


def _hloss_kernel(x_ref, o_ref, *, softmax: bool, tile_r: int,
                  total_rows: int, mask_tail: bool):
    x = x_ref[...].astype(jnp.float32)                       # (tile_r, D)

    if mask_tail:
        # The last block may read past the end of the (unpadded) input.
        # Replace garbage rows with 1.0 so exp/log stay finite; rows are
        # independent and the tail rows are sliced off in the wrapper.
        row = (pl.program_id(0) * tile_r
               + jax.lax.broadcasted_iota(jnp.int32, x.shape, 0))
        x = jnp.where(row < total_rows, x, 1.0)

    if softmax:
        # H = -sum(p * log p), p = softmax(x)
        #   = log(sum(e^z)) - sum(e^z * z) / sum(e^z),  z = x - max(x)
        m = jnp.max(x, axis=-1, keepdims=True)
        z = x - m
        e = jnp.exp(z)
        s = jnp.sum(e, axis=-1, keepdims=True)
        t = jnp.sum(e * z, axis=-1, keepdims=True)
        ent = jnp.log(s) - t / s                              # (tile_r, 1)
    else:
        # Matches torch x * log(x): NaN for exact zeros is intentional.
        ent = -jnp.sum(x * jnp.log(x), axis=-1, keepdims=True)

    # Lane-dense store: relayout (tile_r, 1) -> (1, 1, tile_r) so the output
    # store is wide/unmasked and the writeback DMA is contiguous.
    o_ref[...] = ent.reshape(1, 1, tile_r).astype(o_ref.dtype)


def _pick_tile_r(R: int, D: int, itemsize: int) -> int:
    # Sublane alignment for packed narrow dtypes: 8 rows (f32), 16 (bf16),
    # 32 (int8/fp8).
    align = 8 * max(1, 4 // max(1, itemsize))
    # Target ~2 MiB of f32 working set per block: big enough to amortize the
    # ~0.35 us/step pipeline overhead (measured ~85% of HBM roofline at this
    # scale), small enough that double-buffered input + f32 temporaries stay
    # comfortably under scoped VMEM on every generation (incl. v7x's 64 MiB).
    target_bytes = 2 * 1024 * 1024
    tile = max(align, min(2048, target_bytes // max(1, D * 4)))
    tile = (tile // align) * align
    r_aligned = ((R + align - 1) // align) * align
    tile = min(tile, r_aligned)
    # Keep >=2 grid steps when there is enough work so v7x's two TensorCores
    # both get rows (the grid axis is marked "parallel").
    if tile >= R and R > align:
        half = (R + 1) // 2
        tile = max(align, ((half + align - 1) // align) * align)
    return tile


def hloss(x, softmax=False, tile_r=None):
    """Entropy along the last dim of x. Returns an array of shape x.shape[:-1]."""
    orig_shape = x.shape
    D = orig_shape[-1]
    R = int(math.prod(orig_shape[:-1]))
    x2 = x.reshape(R, D)          # native dtype in HBM; cast to f32 in-kernel

    itemsize = jnp.dtype(x.dtype).itemsize
    if tile_r is None:
        tile_r = _pick_tile_r(R, D, itemsize)
    num_tiles = (R + tile_r - 1) // tile_r

    kernel = functools.partial(
        _hloss_kernel, softmax=softmax, tile_r=tile_r, total_rows=R,
        mask_tail=(R % tile_r != 0))

    # TODO(synk): for vocab-scale D (block no longer fits VMEM), add a second
    # "arbitrary" grid axis over D with online max/sum-exp/sum(e*z) scratch so
    # tile_r can stay large.
    out = pl.pallas_call(
        kernel,
        # Lane-dense output layout: one (1, tile_r) row of entropies per grid
        # step; the wrapper flattens and slices back to R rows.
        out_shape=jax.ShapeDtypeStruct((num_tiles, 1, tile_r), x.dtype),
        grid_spec=pltpu.PrefetchScalarGridSpec(
            num_scalar_prefetch=0,
            grid=(num_tiles,),
            in_specs=[pl.BlockSpec((tile_r, D), lambda i: (i, 0))],
            out_specs=pl.BlockSpec((1, 1, tile_r), lambda i: (i, 0, 0)),
        ),
        compiler_params=pltpu.CompilerParams(
            dimension_semantics=("parallel",),
            # v5e's default scoped VMEM is only 16 MiB; 32 MiB fits the
            # enlarged blocks and is safe on every generation (v7x: 64 MiB
            # physical per TensorCore).
            vmem_limit_bytes=32 * 1024 * 1024,
        ),
    )(x2)

    return out.reshape(num_tiles * tile_r)[:R].reshape(orig_shape[:-1])


def _hloss_ref(x, softmax):
    x = x.astype(jnp.float32)
    if softmax:
        p = jax.nn.softmax(x, axis=-1)
        logp = jax.nn.log_softmax(x, axis=-1)
        return -(p * logp).sum(-1)
    return -(x * jnp.log(x)).sum(-1)


if __name__ == "__main__":
    key = jax.random.PRNGKey(0)
    k1, k2, k3 = jax.random.split(key, 3)

    # softmax=True mode: logits (batch=2, seq=8, hidden=128)
    logits = jax.random.normal(k1, (2, 8, 128), dtype=jnp.float32)
    out_sm = jax.block_until_ready(hloss(logits, softmax=True))
    ref_sm = _hloss_ref(logits, softmax=True)
    assert out_sm.shape == (2, 8)
    assert jnp.allclose(out_sm, ref_sm, atol=1e-4, rtol=1e-4)

    # softmax=False mode: positive probability-like inputs
    # (batch=2, channels=4, seq=8, hidden=32)
    probs = jax.nn.softmax(
        jax.random.normal(k2, (2, 4, 8, 32), dtype=jnp.float32), axis=-1)
    out_p = jax.block_until_ready(hloss(probs, softmax=False))
    ref_p = _hloss_ref(probs, softmax=False)
    assert out_p.shape == (2, 4, 8)
    assert jnp.allclose(out_p, ref_p, atol=1e-4, rtol=1e-4)

    # Multi-block grid + in-kernel tail masking (R=150 is not a tile multiple)
    logits2 = jax.random.normal(k3, (3, 50, 128), dtype=jnp.float32)
    out_t = jax.block_until_ready(hloss(logits2, softmax=True))
    ref_t = _hloss_ref(logits2, softmax=True)
    assert out_t.shape == (3, 50)
    assert jnp.allclose(out_t, ref_t, atol=1e-4, rtol=1e-4)

    print("KERNEL_OK")
</pallas_src>

<mosaic_0001>
module attributes {stable_mosaic.version = 11 : i64} {
  func.func @_hloss_kernel(%arg0: i32, %arg1: memref<8x128xf32, #tpu.memory_space<vmem>>, %arg2: memref<1x1x8xf32, #tpu.memory_space<vmem>>) attributes {dimension_semantics = [#tpu.dimension_semantics<parallel>], iteration_bounds = array<i64: 2>, scalar_prefetch = 0 : i64, scratch_operands = 0 : i64, tpu.core_type = #tpu.core_type<tc>, window_params = [{transform_indices = @transform_0, window_bounds = array<i64: 8, 128>}, {transform_indices = @transform_1, window_bounds = array<i64: 1, 1, 8>}]} {
    %c0 = arith.constant 0 : index
    %c0_0 = arith.constant 0 : index
    %0 = vector.load %arg1[%c0, %c0_0] : memref<8x128xf32, #tpu.memory_space<vmem>>, vector<8x128xf32>
    %cst = arith.constant dense<0xFF800000> : vector<8xf32>
    %1 = vector.multi_reduction <maximumf>, %0, %cst [1] : vector<8x128xf32> to vector<8xf32>
    %2 = vector.shape_cast %1 : vector<8xf32> to vector<8x1xf32>
    %3 = vector.broadcast %2 : vector<8x1xf32> to vector<8x128xf32>
    %4 = arith.subf %0, %3 : vector<8x128xf32>
    %5 = math.exp %4 : vector<8x128xf32>
    %cst_1 = arith.constant dense<0.000000e+00> : vector<8xf32>
    %6 = vector.multi_reduction <add>, %5, %cst_1 [1] : vector<8x128xf32> to vector<8xf32>
    %7 = vector.shape_cast %6 : vector<8xf32> to vector<8x1xf32>
    %8 = arith.mulf %5, %4 : vector<8x128xf32>
    %cst_2 = arith.constant dense<0.000000e+00> : vector<8xf32>
    %9 = vector.multi_reduction <add>, %8, %cst_2 [1] : vector<8x128xf32> to vector<8xf32>
    %10 = vector.shape_cast %9 : vector<8xf32> to vector<8x1xf32>
    %11 = math.log %7 : vector<8x1xf32>
    %12 = arith.divf %10, %7 : vector<8x1xf32>
    %13 = arith.subf %11, %12 : vector<8x1xf32>
    %14 = vector.shape_cast %13 : vector<8x1xf32> to vector<1x1x8xf32>
    %c0_3 = arith.constant 0 : index
    %c0_4 = arith.constant 0 : index
    %c0_5 = arith.constant 0 : index
    %15 = vector.load %arg2[%c0_3, %c0_4, %c0_5] : memref<1x1x8xf32, #tpu.memory_space<vmem>>, vector<1x1x8xf32>
    tpu.vector_store %arg2[%c0_3, %c0_4, %c0_5], %14 {strides = array<i32>} : memref<1x1x8xf32, #tpu.memory_space<vmem>>, vector<1x1x8xf32>,
    return
  }
  func.func @transform_0(%arg0: i32) -> (i32, i32) {
    %c0_i32 = arith.constant 0 : i32
    %c0_i32_0 = arith.constant 0 : i32
    return %arg0, %c0_i32 : i32, i32
  }
  func.func @transform_1(%arg0: i32) -> (i32, i32, i32) {
    %c0_i32 = arith.constant 0 : i32
    %c0_i32_0 = arith.constant 0 : i32
    %c0_i32_1 = arith.constant 0 : i32
    return %arg0, %c0_i32, %c0_i32_0 : i32, i32, i32
  }
}

</mosaic_0001>

<bundles_post_ra>
// kernel: tpu_custom_call.1
= control target key start
LH: loop header
LB: loop body
LE: loop exit
PB: predicated region body
PF: predicated region fallthrough
CT: control target
= control target key end

     0   :  { %6 = vsyncpa [#allocation3], 0  ;;  %s570_s0 = inlined_call_operand.hbm [shape: f32[16,128], index: 0, kind: input, shape index: {}]   ;;  %s571_s1 = inlined_call_operand.hbm [shape: f32[2,1,8], index: 1, kind: output, shape index: {}]  }
   0x1   :  { %8 = vsyncpa [#allocation3 + $0x1], 0 }
   0x2   :  { %9 = vsyncpa [#allocation4], 0 }
   0x3   :  { %11 = vsyncpa [#allocation4 + $0x1], 0  ;;  %s408_s6 = smov 0   ;;  %s410_s7 = smov 0  }
   0x4   :  { %s412_s8 = smov 0   ;;  %s414_s9 = smov 0  }
   0x5 LB: > { %s429_s10 = sadd.s32 4294967295, %s394_s9   ;;  %s236_s11 = sadd.s32 4294967294, %s394_s9   ;;  %s394_s9 = sphi %s414_s9, %s586_s9   ;;  %s390_s8 = sphi %s412_s8, %s585_s8   ;;  %s386_s7 = sphi %s410_s7, %s584_s7   ;;  %s382_s6 = sphi %s408_s6, %s583_s6  }
   0x6   : > { %s433_s12 = sadd.s32 1, %s394_s9   ;;  %s24_s13 = sadd.s32 1, %s390_s8 }
   0x7   : > { %s21_s14 = ssub.s32 %s394_s9, %s433_s12  ;;  %p31_p0 = scmp.ne.s32.totalorder %s390_s8, %s386_s7 }
   0x8   : > { %p22_p1 = scmp.eq.s32.totalorder %s21_s14, 0  ;;  %p32_p2 = scmp.eq.s32.totalorder %s394_s9, 0 }
   0x9   : > { %p37_p3 = scmp.ne.s32.totalorder %s386_s7, %s382_s6  ;;  %p38_p4 = scmp.eq.s32.totalorder %s429_s10, 0 }
   0xa   : > { %s445_s15 = scalar_select %p22_p1, %s390_s8, %s24_s13  }
   0xb   : > { %p447_p5 = por %p32_p2, %p31_p0  ;;  %p451_p6 = por %p38_p4, %p37_p3 }
   0xc   : > { %p61_p7 = scmp.eq.s32.totalorder %s429_s10, 1  ;;  %p67_p8 = scmp.eq.s32.totalorder %s236_s11, 1 }
   0xd   : > { %p258_p10 = scmp.lt.s32.totalorder %s394_s9, 2  ;;  %s87_s20 = sand.u32 1, %s390_s8  }
   0xe   : > { %p458_p11 = por %p61_p7, %p31_p0  ;;  %p462_p12 = por %p67_p8, %p37_p3 }
   0xf   : > { %s240_s21 = sshll.u32 %s394_s9, 7  ;;  %s239_s22 = sshll.u32 %s87_s20, 3 }
  0x10   : > { %s575_s18 = scalar_select %p458_p11, 1, 0 }
  0x11   : > { %s576_s19 = scalar_select %p462_p12, 1, 0 }
  0x12   : > { %s471_s25 = scalar_lea.hbm %s570_s0, %s240_s21  ;;  %s91_s26 = scalar_lea.vmem [#allocation2], %s239_s22 }
  0x13   : > { %s98_s27 = sshll.u32 %s91_s26, 4  ;;  %p475_p13 = pnand %p258_p10, %p447_p5  ;;  %s479_s27 = int_to_ptr.vmem [resolvable:$true] %s98_s27 }
  0x14   : > { %s88_s29 = scalar_lea.sflag [#allocation3], %s87_s20  ;;  %s298_s30 = scalar_lea.hbm %s471_s25, 128 }
  0x15   : > { %p299_p2 = scmp.ne.s32.totalorder %s471_s25, %s298_s30  ;;  %p300_p3 = pneg %p475_p13 }
  0x16   : > { %s303_s4 = scalar_lea.hbm %s570_s0, 256  ;;  %p304_p5 = scmp.lt.u32.totalorder %s471_s25, %s570_s0 }
  0x17   : > { %p301_p4 = pnand %p300_p3, %p299_p2  ;;  %p305_p8 = scmp.lt.u32.totalorder %s303_s4, %s298_s30 }
  0x18   : > { %p307_p9 = scmp.lt.u32.totalorder %s298_s30, %s471_s25 }
  0x19   : > { %p302_p7 = pneg %p301_p4  ;;  %p306_p10 = por %p305_p8, %p304_p5 }
  0x1b   : > { %p308_p0 = por %p307_p9, %p306_p10 }
  0x1d   : > { %p309_p1 = pnand %p308_p0, %p302_p7 }
  0x1f   : > { %312 = shalt.err (!%p309_p1)
}
  0x20   : > { %s313_s13 = scalar_lea.vmem %s479_s27, 128  ;;  %s396_s14 = smov [#allocation2]  }
  0x21   : > { %p314_p2 = scmp.ne.s32.totalorder %s479_s27, %s313_s13  ;;  %s318_s16 = sshll.u32 %s396_s14, 4  ;;  %s319_s16 = int_to_ptr.vmem [resolvable:$false] %s318_s16 }
  0x22   : > { %s320_s20 = scalar_lea.vmem %s319_s16, 256  ;;  %p321_p11 = scmp.lt.s32.totalorder %s479_s27, %s319_s16 }
  0x23   : > { %p316_p4 = pnand %p314_p2, %p300_p3  ;;  %p322_p5 = scmp.lt.s32.totalorder %s320_s20, %s313_s13 }
  0x25   : > { %p317_p12 = pneg %p316_p4  ;;  %p323_p8 = por %p322_p5, %p321_p11 }
  0x27   : > { %p324_p9 = pnand %p323_p8, %p317_p12 }
  0x29   : > { %327 = shalt.err (!%p324_p9)
}
  0x2a   : > { %253 = dma.hbm_to_vmem [thread:$0]  (!%p475_p13), %s471_s25, 128, %s479_s27, %s88_s29  }
  0x2b   : > { %p578_p0 = scmp.lt.s32.totalorder %s394_s9, 3  ;;  %p579_p1 = scmp.ge.s32.totalorder %s394_s9, 1 }
  0x2d   : > { %p104_p3 = pnand %p579_p1, %p578_p0 }
  0x2e   : > { %s513_s21 = sand.u32 (!%p104_p3), 1, %s386_s7  }
  0x2f   : > { %107 = sbr.rel (%p104_p3) target bundleno = 387 (0x183), region = 24  ;;  %s242_s22 = sshll.u32 (!%p104_p3), %s513_s21, 3 }
  0x30   : > { %s110_s23 = scalar_lea.sflag (!%p104_p3), [#allocation3], %s513_s21  ;;  %s113_s24 = scalar_lea.vmem (!%p104_p3), [#allocation2], %s242_s22 }
  0x36   : > { %373 = dma.done.wait (%p451_p6), %s110_s23, 128  }
  0x37   : > { %375 = vsyncadd (%p451_p6), %s110_s23, 4294967168  ;;  %v131_v0 = vld [vmem:[%s113_s24] sm:$0xff]  ;;  %v148_v7 = vlaneseq  ;;  %s243_s17 = sshll.u32 %s429_s10, 4  ;;  %s130_s25 = scalar_lea.vmem [#allocation5], %s513_s21  ;;  %vm155_vm0 = vcmask 57344  }
  0x38   : > { %132 = vmax.xlane.f32.xlu0 %v131_v0  ;;  %s170_s26 = sshll.u32 %s130_s25, 4  ;;  %s526_s29 = scalar_lea.hbm %s571_s1, %s243_s17  ;;  %s528_s26 = int_to_ptr.vmem [resolvable:$true] %s170_s26 }
  0x39   : > { %v149_v8 = vand.u32 127, %v148_v7  ;;  %v151_v9 = vshrl.u32 %v148_v7, 7  ;;  %s158_s30 = scalar_lea.sflag [#allocation4], %s513_s21  ;;  %s328_s2 = scalar_lea.vmem %s528_s26, 16 }
  0x3a   : > { %p329_p6 = scmp.ne.s32.totalorder %s528_s26, %s328_s2  ;;  %p580_p11 = scmp.ne.s32.totalorder %s575_s18, 0 }
  0x3b   : > { %v152_v14 = vsub.s32 %v149_v8, %v151_v9  ;;  %s397_s10 = smov [#allocation5]  }
  0x3c   : > { %p330_p12 = pnand %p329_p6, %p580_p11  ;;  %s332_s3 = sshll.u32 %s397_s10, 4  ;;  %s333_s3 = int_to_ptr.vmem [resolvable:$false] %s332_s3 }
  0x3d   : > { %s334_s4 = scalar_lea.vmem %s333_s3, 32  ;;  %p335_p7 = scmp.lt.s32.totalorder %s528_s26, %s333_s3 }
  0x3e   : > { %p331_p13 = pneg %p330_p12  ;;  %p336_p10 = scmp.lt.s32.totalorder %s334_s4, %s328_s2 }
  0x40   : > { %p337_p2 = por %p336_p10, %p335_p7 }
  0x42   : > { %p338_p4 = pnand %p337_p2, %p331_p13 }
  0xc5   : > { %v133_v1 = vpop.xlane.xlu0 %132 }
  0xc6   : > { %v134_v2 = vsub.f32 %v131_v0, %v133_v1 }
  0xc8   : > { %v135_v3 = vmul.f32 1.442695, %v134_v2 }
  0xca   : > { %292 = vpow2.f32 %v135_v3 }
  0xd4   : > { %v293_v4 = vpop.eup %292 }
  0xd5   : > { %137 = vadd.xlane.f32.xlu0 %v293_v4  ;;  %v139_v5 = vmul.f32 %v293_v4, %v134_v2 }
  0xd7   : > { %140 = vadd.xlane.f32.xlu1 %v139_v5 }
 0x162   : > { %v138_v6 = vpop.xlane.xlu0 %137 }
 0x163   : > { %294 = vlog2.f32 %v138_v6 }
 0x164   : > { %296 = vrcp.f32 %v138_v6  ;;  %v141_v13 = vpop.xlane.xlu1 %140 }
 0x16d   : > { %v295_v10 = vpop.eup %294 }
 0x16e   : > { %v297_v11 = vpop.eup %296  ;;  %v143_v12 = vmul.f32 0.6931472, %v295_v10 }
 0x16f   : > { %v145_v15 = vmul.f32 %v297_v11, %v141_v13 }
 0x171   : > { %v146_v16 = vsub.f32 %v143_v12, %v145_v15 }
 0x173   : > { %v153_v17 = vrot.slane %v146_v16, %v152_v14 }
 0x175   : > { %156 = vst.msk [vmem:[%s130_s25] sm:$0x1] %vm155_vm0, %v153_v17 }
 0x176   : > { %341 = shalt.err (!%p338_p4)
}
 0x177   : > { %s342_s5 = scalar_lea.hbm %s526_s29, 16  ;;  %s346_s14 = scalar_lea.hbm %s571_s1, 32 }
 0x178   : > { %p343_p5 = scmp.ne.s32.totalorder %s526_s29, %s342_s5  ;;  %p347_p0 = scmp.lt.u32.totalorder %s526_s29, %s571_s1 }
 0x179   : > { %p348_p1 = scmp.lt.u32.totalorder %s346_s14, %s342_s5  ;;  %p350_p6 = scmp.lt.u32.totalorder %s342_s5, %s526_s29 }
 0x17a   : > { %p344_p8 = pnand %p343_p5, %p580_p11 }
 0x17b   : > { %p349_p3 = por %p348_p1, %p347_p0 }
 0x17c   : > { %p345_p9 = pneg %p344_p8 }
 0x17d   : > { %p351_p12 = por %p350_p6, %p349_p3 }
 0x17f   : > { %p352_p13 = pnand %p351_p12, %p345_p9 }
 0x181   : > { %355 = shalt.err (!%p352_p13)
}
 0x182   : > { %248 = dma.vmem_to_hbm [thread:$0]  (%p580_p11), %s528_s26, 16, %s526_s29, %s158_s30  }
 0x183 PF: > { %s182_s21 = sand.u32 1, %s382_s6   ;;  %p581_p7 = scmp.ne.s32.totalorder %s576_s19, 0 }
 0x184   : > { %p582_p10 = scmp.ge.s32.totalorder %s394_s9, 2  ;;  %s183_s22 = scalar_lea.sflag [#allocation4], %s182_s21 }
 0x186   : > { %p255_p2 = pnand %p582_p10, %p581_p7 }
 0x188   : > { %377 = dma.done.wait (!%p255_p2), %s183_s22, 16  }
 0x189   : > { %379 = vsyncadd (!%p255_p2), %s183_s22, 4294967280  ;;  %p14_p4 = scmp.ge.s32.totalorder %s433_s12, 4   ;;  %s583_s6 = smov %s386_s7 }
 0x18a   : > { %s584_s7 = smov %s390_s8  ;;  %s585_s8 = smov %s445_s15 }
 0x18b   : > { %s586_s9 = smov %s433_s12  ;;  %16 = sbr.rel (!%p14_p4) target bundleno = 5 (0x5), region = 69 }
 0x192   :  { %187 = vsyncpa [#allocation3], 1 }
 0x193   :  { %189 = vsyncpa [#allocation3 + $0x1], 1 }
 0x194   :  { %190 = vsyncpa [#allocation4], 1 }
 0x195   :  { %192 = vsyncpa [#allocation4 + $0x1], 1 }

</bundles_post_ra>
